<compile_context>
chip_gen: v6e
topology: v6e:2x2x1
jax: 0.10.0
libtpu: 0.0.40
codegen_flags: <defaults>
</compile_context>

<pallas_src>
import math

import jax
import jax.numpy as jnp
from jax import lax
from jax.experimental import pallas as pl
from jax.experimental.pallas import tpu as pltpu


def make_positional_encoding_table(d_model, max_len, dtype=jnp.float32):
    """The module's `pe` buffer, squeezed to (max_len, d_model).

    Build it in the activation dtype so the kernel reads it without a cast.
    """
    position = jnp.arange(max_len, dtype=jnp.float32)[:, None]              # (L, 1)
    div_term = jnp.exp(jnp.arange(0, d_model, 2, dtype=jnp.float32)
                       * (-math.log(10000.0) / d_model))                    # (ceil(D/2),)
    angles = position * div_term                                            # (L, ceil(D/2))
    pe = jnp.zeros((max_len, d_model), dtype=jnp.float32)
    pe = pe.at[:, 0::2].set(jnp.sin(angles))
    pe = pe.at[:, 1::2].set(jnp.cos(angles)[:, : d_model // 2])
    return pe.astype(dtype)                                                 # (L, D)


def _make_pe_kernel(*, ts, B, D, p_drop, training):
    apply_dropout = bool(training) and p_drop > 0.0
    inv_keep = 1.0 / (1.0 - p_drop) if p_drop < 1.0 else 0.0
    # keep element iff (31 random bits) >= thresh
    thresh = min(int(round(p_drop * (1 << 31))), (1 << 31) - 1)

    def kernel(seed_ref, x_ref, pe_ref, o_ref):
        # x_ref/o_ref: (ts, B, D); pe_ref: (ts, D) broadcast over the batch dim.
        y = x_ref[...] + pe_ref[...][:, None, :].astype(x_ref.dtype)
        if apply_dropout:
            shp = (ts, B, D)
            s_idx = lax.broadcasted_iota(jnp.uint32, shp, 0)
            b_idx = lax.broadcasted_iota(jnp.uint32, shp, 1)
            c_idx = lax.broadcasted_iota(jnp.uint32, shp, 2)
            base = (pl.program_id(0) * ts).astype(jnp.uint32)
            # Global element id: ((seq_pos) * B + batch) * D + channel.
            gid = ((base + s_idx) * jnp.uint32(B) + b_idx) * jnp.uint32(D) + c_idx
            # Stateless counter-based hash (murmur3 finalizer); seed is mixed
            # through the avalanche so blocks/elements are decorrelated.
            h = gid + seed_ref[0].astype(jnp.uint32) * jnp.uint32(0x9E3779B9)
            h = h ^ (h >> jnp.uint32(16))
            h = h * jnp.uint32(0x85EBCA6B)
            h = h ^ (h >> jnp.uint32(13))
            h = h * jnp.uint32(0xC2B2AE35)
            h = h ^ (h >> jnp.uint32(16))
            bits31 = (h >> jnp.uint32(1)).astype(jnp.int32)     # < 2**31, exact
            keep = bits31 >= jnp.int32(thresh)
            y = jnp.where(keep, y * jnp.asarray(inv_keep, y.dtype),
                          jnp.zeros_like(y))
        o_ref[...] = y.astype(o_ref.dtype)

    return kernel


def positional_encoding(x, pe, *, p_drop=0.2, training=False, seed=0,
                        target_block_bytes=4 << 20):
    """forward(x) of PositionalEncoding: dropout(x + pe[:S]).

    x:  (seq_len, batch, d_model)
    pe: (max_len, d_model) or the module's (max_len, 1, d_model) buffer.
    """
    S, B, D = x.shape
    if pe.ndim == 3:
        assert pe.shape[1] == 1
        pe = pe.reshape(pe.shape[0], pe.shape[-1])          # zero-copy squeeze
    max_len, Dp = pe.shape
    assert Dp == D and max_len >= S, "pe must cover the sequence length"
    if pe.dtype != x.dtype:
        pe = pe.astype(x.dtype)   # prefer building pe in x.dtype (no-op then)

    itemsize = jnp.dtype(x.dtype).itemsize
    # Sublane alignment for the (ts, D) pe block: 8 for f32, 16 for bf16, ...
    sub = max(8, 32 // itemsize)
    # VMEM footprint per sequence position of an x block (lane-padded to 128).
    d_pad = -(-D // 128) * 128
    bytes_per_pos = max(1, B * d_pad * itemsize)

    ts = max(1, int(target_block_bytes) // bytes_per_pos)   # ~4 MiB x blocks
    ts = min(ts, pl.cdiv(S, 2))        # v7x: >= 2 grid steps so both TCs work
    ts = max(sub, (ts // sub) * sub)   # sublane-aligned blocks
    grid = (pl.cdiv(S, ts),)           # ragged last block handled by Pallas

    seed_arr = jnp.asarray([seed], dtype=jnp.int32)
    kernel = _make_pe_kernel(ts=ts, B=B, D=D, p_drop=float(p_drop),
                             training=training)

    return pl.pallas_call(
        kernel,
        out_shape=jax.ShapeDtypeStruct((S, B, D), x.dtype),
        grid_spec=pltpu.PrefetchScalarGridSpec(
            num_scalar_prefetch=1,          # dropout seed (SMEM)
            grid=grid,
            in_specs=[
                pl.BlockSpec((ts, B, D), lambda i, seed: (i, 0, 0)),
                pl.BlockSpec((ts, D), lambda i, seed: (i, 0)),
            ],
            out_specs=pl.BlockSpec((ts, B, D), lambda i, seed: (i, 0, 0)),
        ),
        compiler_params=pltpu.CompilerParams(
            dimension_semantics=("parallel",),
            vmem_limit_bytes=32 * 1024 * 1024,
        ),
    )(seed_arr, x, pe)


if __name__ == "__main__":
    key = jax.random.PRNGKey(0)
    seq_len, batch, d_model, max_len = 8, 2, 32, 16

    x = jax.random.normal(key, (seq_len, batch, d_model), dtype=jnp.float32)
    pe = make_positional_encoding_table(d_model, max_len, dtype=x.dtype)

    # Eval-mode forward (nn.Dropout.eval() is identity): must match reference.
    y = jax.block_until_ready(positional_encoding(x, pe, p_drop=0.2,
                                                  training=False))
    y_ref = x + pe[:seq_len][:, None, :]
    assert y.shape == x.shape and y.dtype == x.dtype
    assert jnp.allclose(y, y_ref, atol=1e-5, rtol=1e-5)

    # Training-mode forward: kept elements equal (x + pe) / (1 - p), dropped are 0.
    # (Mask is statistically equivalent to torch's nn.Dropout, not bit-identical.)
    p = 0.2
    scale = 1.0 / (1.0 - p)
    y_tr = jax.block_until_ready(positional_encoding(x, pe, p_drop=p,
                                                     training=True, seed=123))
    assert y_tr.shape == x.shape and y_tr.dtype == x.dtype
    kept = y_tr != 0.0
    err = jnp.where(kept, y_tr - y_ref * scale, 0.0)
    assert jnp.allclose(err, 0.0, atol=1e-5)
    drop_frac = 1.0 - float(jnp.mean(kept.astype(jnp.float32)))
    assert 0.02 < drop_frac < 0.5, drop_frac   # expected ~0.2

    print("KERNEL_OK")
</pallas_src>

<mosaic_0001>
module attributes {stable_mosaic.version = 11 : i64} {
  func.func @kernel(%arg0: i32, %arg1: memref<1xi32, #tpu.memory_space<smem>>, %arg2: memref<8x2x32xf32, #tpu.memory_space<vmem>>, %arg3: memref<8x32xf32, #tpu.memory_space<vmem>>, %arg4: memref<8x2x32xf32, #tpu.memory_space<vmem>>) attributes {dimension_semantics = [#tpu.dimension_semantics<parallel>], iteration_bounds = array<i64: 1>, scalar_prefetch = 1 : i64, scratch_operands = 0 : i64, tpu.core_type = #tpu.core_type<tc>, window_params = [{transform_indices = @transform_0, window_bounds = array<i64: 8, 2, 32>}, {transform_indices = @transform_1, window_bounds = array<i64: 8, 32>}, {transform_indices = @transform_2, window_bounds = array<i64: 8, 2, 32>}]} {
    %c0 = arith.constant 0 : index
    %c0_0 = arith.constant 0 : index
    %c0_1 = arith.constant 0 : index
    %0 = vector.load %arg2[%c0, %c0_0, %c0_1] : memref<8x2x32xf32, #tpu.memory_space<vmem>>, vector<8x2x32xf32>
    %c0_2 = arith.constant 0 : index
    %c0_3 = arith.constant 0 : index
    %1 = vector.load %arg3[%c0_2, %c0_3] : memref<8x32xf32, #tpu.memory_space<vmem>>, vector<8x32xf32>
    %2 = vector.shape_cast %1 : vector<8x32xf32> to vector<8x1x32xf32>
    %3 = vector.broadcast %2 : vector<8x1x32xf32> to vector<8x2x32xf32>
    %4 = arith.addf %0, %3 : vector<8x2x32xf32>
    %c0_4 = arith.constant 0 : index
    %c0_5 = arith.constant 0 : index
    %c0_6 = arith.constant 0 : index
    %5 = vector.load %arg4[%c0_4, %c0_5, %c0_6] : memref<8x2x32xf32, #tpu.memory_space<vmem>>, vector<8x2x32xf32>
    tpu.vector_store %arg4[%c0_4, %c0_5, %c0_6], %4 {strides = array<i32>} : memref<8x2x32xf32, #tpu.memory_space<vmem>>, vector<8x2x32xf32>,
    return
  }
  func.func @transform_0(%arg0: i32, %arg1: memref<1xi32, #tpu.memory_space<smem>>) -> (i32, i32, i32) {
    %c0_i32 = arith.constant 0 : i32
    %c0_i32_0 = arith.constant 0 : i32
    %c0_i32_1 = arith.constant 0 : i32
    return %arg0, %c0_i32, %c0_i32_0 : i32, i32, i32
  }
  func.func @transform_1(%arg0: i32, %arg1: memref<1xi32, #tpu.memory_space<smem>>) -> (i32, i32) {
    %c0_i32 = arith.constant 0 : i32
    %c0_i32_0 = arith.constant 0 : i32
    return %arg0, %c0_i32 : i32, i32
  }
  func.func @transform_2(%arg0: i32, %arg1: memref<1xi32, #tpu.memory_space<smem>>) -> (i32, i32, i32) {
    %c0_i32 = arith.constant 0 : i32
    %c0_i32_0 = arith.constant 0 : i32
    %c0_i32_1 = arith.constant 0 : i32
    return %arg0, %c0_i32, %c0_i32_0 : i32, i32, i32
  }
}

</mosaic_0001>

<bundles_post_ra>
// kernel: tpu_custom_call.1
= control target key start
LH: loop header
LB: loop body
LE: loop exit
PB: predicated region body
PF: predicated region fallthrough
CT: control target
= control target key end

     0   :  { %9 = vsyncpa [#allocation5], 0  ;;  %s295_s0 = inlined_call_operand.<no memory space> [shape: s32[1], index: 0, kind: input, shape index: {}]   ;;  %s296_s1 = inlined_call_operand.hbm [shape: f32[8,2,32], index: 1, kind: input, shape index: {}]   ;;  %s297_s2 = inlined_call_operand.hbm [shape: f32[16,32], index: 2, kind: input, shape index: {}]   ;;  %s298_s3 = inlined_call_operand.hbm [shape: f32[8,2,32], index: 3, kind: output, shape index: {}]  }
   0x1   :  { %10 = vsyncpa [#allocation8], 0 }
   0x2   :  { %11 = vsyncpa [#allocation6], 0  ;;  %s246_s12 = smov [#allocation4]  }
   0x3   :  { %s17_s13 = sshll.u32 %s246_s12, 4  ;;  %s18_s13 = int_to_ptr.vmem [resolvable:$true] %s17_s13 }
   0x4   :  { %s188_s14 = scalar_lea.vmem %s18_s13, 256  ;;  %p193_p1 = scmp.lt.s32.totalorder %s18_s13, %s18_s13 }
   0x5   :  { %p189_p0 = scmp.ne.s32.totalorder %s18_s13, %s188_s14  ;;  %p194_p2 = scmp.lt.s32.totalorder %s188_s14, %s188_s14 }
   0x7   :  { %p195_p3 = por %p194_p2, %p193_p1 }
   0x9   :  { %p196_p4 = pnand %p195_p3, %p189_p0 }
   0xb   :  { %199 = shalt.err (!%p196_p4)
}
   0xc   :  { %s247_s0 = smov 32   ;;  %s248_s15 = smov 2  }
   0xd   :  { %23 = dma.hbm_to_vmem [thread:$0]  %s296_s1, 256, %s18_s13, [#allocation5], %s247_s0, %s247_s0, %s248_s15  }
   0xe   :  { %s249_s18 = smov [#allocation7]  }
   0xf   :  { %s30_s19 = sshll.u32 %s249_s18, 4  ;;  %s31_s19 = int_to_ptr.vmem [resolvable:$true] %s30_s19 }
  0x10   :  { %s208_s20 = scalar_lea.vmem %s31_s19, 128  ;;  %p213_p6 = scmp.lt.s32.totalorder %s31_s19, %s31_s19 }
  0x11   :  { %p209_p5 = scmp.ne.s32.totalorder %s31_s19, %s208_s20  ;;  %p214_p7 = scmp.lt.s32.totalorder %s208_s20, %s208_s20 }
  0x13   :  { %p215_p8 = por %p214_p7, %p213_p6 }
  0x15   :  { %p216_p9 = pnand %p215_p8, %p209_p5 }
  0x17   :  { %219 = shalt.err (!%p216_p9)
}
  0x18   :  { %33 = dma.hbm_to_vmem [thread:$0]  %s297_s2, 128, %s31_s19, [#allocation8]  }
  0x19   :  { %240 = dma.done.wait [#allocation5], 256  }
  0x1a   :  { %241 = vsyncadd [#allocation5], 4294967040 }
  0x1b   :  { %242 = dma.done.wait [#allocation8], 128  }
  0x1c   :  { %243 = vsyncadd [#allocation8], 4294967168  ;;  %v54_v0 = vlaneseq  ;;  %v250_v1 = vmov 1966171168   ;;  %v48_v6 = vld [vmem:[#allocation7] sm:$0xff]  ;;  %vm147_vm0 = vcmask 254976  }
  0x1d   :  { %v52_v2 = vunpack.c.l.s4 %v250_v1  ;;  %v50_v9 = vcombine.high %v48_v6, %v48_v6  ;;  %v40_v13 = vld [vmem:[#allocation4] sm:$0x3]  ;;  %v41_v18 = vld [vmem:[#allocation4 + $0x2] sm:$0x3]  ;;  %v42_v19 = vld [vmem:[#allocation4 + $0x4] sm:$0x3] }
  0x1e   :  { %v55_v3 = vshrl.u32 %v54_v0, 7  ;;  %v44_v25 = vld [vmem:[#allocation4 + $0x8] sm:$0x3]  ;;  %v43_v26 = vld [vmem:[#allocation4 + $0x6] sm:$0x3]  ;;  %s251_s1 = smov [#allocation9]  }
  0x1f   :  { %v53_v4 = vunpack.c.0.s8 %v52_v2  ;;  %v45_v33 = vld [vmem:[#allocation4 + $0xa] sm:$0x3]  ;;  %v46_v34 = vld [vmem:[#allocation4 + $0xc] sm:$0x3]  ;;  %v47_v40 = vld [vmem:[#allocation4 + $0xe] sm:$0x3] }
  0x20   :  { %v101_v8 = vsub.s32 0, %v55_v3  ;;  %s161_s2 = sshll.u32 %s251_s1, 4  ;;  %s162_s2 = int_to_ptr.vmem [resolvable:$true] %s161_s2 }
  0x21   :  { %v56_v5 = vsub.s32 %v53_v4, %v55_v3  ;;  %s220_s23 = scalar_lea.vmem %s162_s2, 256  ;;  %p225_p11 = scmp.lt.s32.totalorder %s162_s2, %s162_s2 }
  0x22   :  { %p221_p10 = scmp.ne.s32.totalorder %s162_s2, %s220_s23  ;;  %p226_p12 = scmp.lt.s32.totalorder %s220_s23, %s220_s23 }
  0x23   :  { %v57_v7 = vrot.slane %v48_v6, %v56_v5  ;;  %v64_v12 = vrot.slane %v50_v9, %v56_v5 }
  0x24   :  { %p227_p13 = por %p226_p12, %p225_p11 }
  0x25   :  { %v73_v10 = vrot.slane %v57_v7, %v56_v5  ;;  %v65_v11 = vcombine.high %v57_v7, %v57_v7  ;;  %v80_v17 = vrot.slane %v64_v12, %v56_v5  ;;  %v66_v20 = vcombine.high %v64_v12, %v64_v12 }
  0x26   :  { %p228_p0 = pnand %p227_p13, %p221_p10 }
  0x27   :  { %v102_v14 = vrot.slane %v73_v10, %v101_v8  ;;  %v87_v15 = vrot.slane %v65_v11, %v56_v5  ;;  %v95_v16 = vcombine.high %v73_v10, %v73_v10  ;;  %v118_v27 = vrot.slane %v80_v17, %v101_v8 }
  0x28   :  { %v94_v28 = vrot.slane %v66_v20, %v56_v5  ;;  %v96_v29 = vcombine.high %v80_v17, %v80_v17 }
  0x29   :  { %v139_v21 = vadd.f32 %v102_v14, %v40_v13  ;;  %v106_v22 = vrot.slane %v87_v15, %v101_v8  ;;  %v110_v23 = vrot.slane %v95_v16, %v101_v8  ;;  %v97_v24 = vcombine.high %v87_v15, %v87_v15 }
  0x2a   :  { %v143_v35 = vadd.f32 %v118_v27, %v44_v25  ;;  %v122_v36 = vrot.slane %v94_v28, %v101_v8  ;;  %v126_v37 = vrot.slane %v96_v29, %v101_v8  ;;  %v98_v38 = vcombine.high %v94_v28, %v94_v28 }
  0x2b   :  { %148 = vst.msk [vmem:[#allocation9] sm:$0x3] %vm147_vm0, %v139_v21  ;;  %v140_v30 = vadd.f32 %v106_v22, %v41_v18  ;;  %v141_v31 = vadd.f32 %v110_v23, %v42_v19  ;;  %v114_v32 = vrot.slane %v97_v24, %v101_v8 }
  0x2c   :  { %152 = vst.msk [vmem:[#allocation9 + $0x8] sm:$0x3] %vm147_vm0, %v143_v35  ;;  %v144_v41 = vadd.f32 %v122_v36, %v45_v33  ;;  %v145_v42 = vadd.f32 %v126_v37, %v46_v34  ;;  %v130_v43 = vrot.slane %v98_v38, %v101_v8 }
  0x2d   :  { %149 = vst.msk [vmem:[#allocation9 + $0x2] sm:$0x3] %vm147_vm0, %v140_v30  ;;  %150 = vst.msk [vmem:[#allocation9 + $0x4] sm:$0x3] %vm147_vm0, %v141_v31  ;;  %v142_v39 = vadd.f32 %v114_v32, %v43_v26 }
  0x2e   :  { %153 = vst.msk [vmem:[#allocation9 + $0xa] sm:$0x3] %vm147_vm0, %v144_v41  ;;  %154 = vst.msk [vmem:[#allocation9 + $0xc] sm:$0x3] %vm147_vm0, %v145_v42  ;;  %v146_v44 = vadd.f32 %v130_v43, %v47_v40 }
  0x2f   :  { %151 = vst.msk [vmem:[#allocation9 + $0x6] sm:$0x3] %vm147_vm0, %v142_v39 }
  0x30   :  { %155 = vst.msk [vmem:[#allocation9 + $0xe] sm:$0x3] %vm147_vm0, %v146_v44 }
  0x31   :  { %231 = shalt.err (!%p228_p0)
}
  0x32   :  { %167 = dma.vmem_to_hbm [thread:$0]  %s162_s2, 256, %s298_s3, [#allocation6], %s247_s0, %s247_s0, %s248_s15  }
  0x33   :  { %244 = dma.done.wait [#allocation6], 256  }
  0x34   :  { %245 = vsyncadd [#allocation6], 4294967040 }
  0x35   :  { %171 = vsyncpa [#allocation5], 1 }
  0x36   :  { %172 = vsyncpa [#allocation8], 1 }
  0x37   :  { %173 = vsyncpa [#allocation6], 1 }

</bundles_post_ra>
